<compile_context>
chip_gen: v6e
topology: v6e:2x2x1
jax: 0.10.0
libtpu: 0.0.40
codegen_flags: <defaults>
</compile_context>

<pallas_src>
import functools
import math

import jax
import jax.numpy as jnp
from jax import lax
from jax.experimental import pallas as pl
from jax.experimental.pallas import tpu as pltpu


NEG_INF = -1e30  # finite "minus infinity": no exp(-inf - -inf) NaNs on masked tiles


def _choose_tile(n, preferred=(512, 256, 128, 64, 32, 16, 8)):
    """Largest preferred tile that divides n (falls back to n itself)."""
    for t in preferred:
        if t <= n and n % t == 0:
            return t
    return n


def _choose_attn_tile(n, n_head, budget_bytes=4 << 20):
    """Largest tile dividing n whose (H, t, t) f32 score block fits the budget."""
    for t in (512, 256, 128, 64, 32, 16, 8):
        if t <= n and n % t == 0 and n_head * t * t * 4 <= budget_bytes:
            return t
    return n


def _vmem_limit(block_bytes):
    # Generation-aware scoped-VMEM request: ~0.75x physical capacity
    # (v5e/v6e 128 MiB -> ~96 MiB, v7x 64 MiB -> ~48 MiB). Never below 32 MiB,
    # never more than roughly what the pipeline needs (+ spill headroom).
    try:
        physical = pltpu.get_tpu_info().vmem_capacity_bytes
    except Exception:  # conservative fallback: assume the smallest (v7x) VMEM
        physical = 64 << 20
    cap = int(0.75 * physical)
    want = 2 * block_bytes + (8 << 20)
    return int(min(max(want, 32 << 20), cap))


# ----------------------- kernel 1: QKV projection + head split -----------------------

def _qkv_proj_kernel(x_ref, w_ref, b_ref, q_ref, k_ref, v_ref, acc_ref, *,
                     n_head, head_dim):
    # x_ref: (TM, TKC) f32   w_ref: (TKC, 3C) bf16   b_ref: (1, 3C) f32
    # q/k/v_ref: (H, TM, D) bf16 outputs   acc_ref: (TM, 3C) f32 scratch
    kc = pl.program_id(2)

    @pl.when(kc == 0)
    def _init():
        acc_ref[...] = jnp.zeros_like(acc_ref)

    # bf16 operands on the MXU, f32 accumulation across the K (=C) tiles.
    x = x_ref[...].astype(w_ref.dtype)
    acc_ref[...] += jnp.dot(x, w_ref[...], preferred_element_type=jnp.float32)

    @pl.when(kc == pl.num_programs(2) - 1)
    def _finalize():
        c = n_head * head_dim
        qkv = acc_ref[...] + b_ref[...]                      # (TM, 3C) f32
        # In-kernel head split/transpose (static lane slices + per-head stores):
        # the XLU/VPU relayout hides under the MXU matmul above and removes the
        # previous wrapper-side (B, T, 3C) transpose round trip through HBM.
        for h in range(n_head):
            lo = h * head_dim
            q_ref[h, :, :] = qkv[:, lo:lo + head_dim].astype(q_ref.dtype)
            k_ref[h, :, :] = qkv[:, c + lo:c + lo + head_dim].astype(k_ref.dtype)
            v_ref[h, :, :] = qkv[:, 2 * c + lo:2 * c + lo + head_dim].astype(v_ref.dtype)


# ------------------ kernel 2: flash attention + output projection -------------------

def _flash_attn_proj_kernel(q_ref, k_ref, v_ref, wp_ref, bp_ref, o_ref,
                            m_sc, l_sc, acc_sc, y_sc, *, n_head, head_dim,
                            tq, tk, scale, compute_dtype):
    # q_ref: (H, TQ, D)  k_ref/v_ref: (H, TK, D)  wp_ref: (C, C)  bp_ref: (1, C)
    # o_ref: (TQ, C)     scratch: m/l (H,TQ,1) f32, acc (H,TQ,D) f32, y (TQ,C) f32
    qi = pl.program_id(1)
    ki = pl.program_id(2)
    nk = pl.num_programs(2)
    q_start = qi * tq
    k_start = ki * tk

    @pl.when(ki == 0)
    def _init():
        m_sc[...] = jnp.full_like(m_sc, NEG_INF)
        l_sc[...] = jnp.zeros_like(l_sc)
        acc_sc[...] = jnp.zeros_like(acc_sc)

    def scores():
        # All heads in one rank-3 contraction on the MXU (no per-head unroll).
        return jnp.einsum('hqd,hkd->hqk', q_ref[...], k_ref[...],
                          preferred_element_type=jnp.float32) * scale

    def online_softmax_update(s):
        m_prev = m_sc[...]
        m_new = jnp.maximum(m_prev, jnp.max(s, axis=-1, keepdims=True))
        alpha = jnp.exp(m_prev - m_new)
        p = jnp.exp(s - m_new)
        l_sc[...] = alpha * l_sc[...] + jnp.sum(p, axis=-1, keepdims=True)
        pv = jnp.einsum('hqk,hkd->hqd', p.astype(compute_dtype), v_ref[...],
                        preferred_element_type=jnp.float32)
        acc_sc[...] = alpha * acc_sc[...] + pv
        m_sc[...] = m_new

    # Tiles strictly below the causal diagonal are fully unmasked: skip the
    # iota/compare/select on those (the vast majority of) steps.
    below_diag = k_start + (tk - 1) <= q_start
    on_diag = jnp.logical_and(k_start + (tk - 1) > q_start,
                              k_start <= q_start + (tq - 1))
    # k_start > q_start + tq - 1: fully masked -> neither branch runs; the DMA
    # for those tiles is also elided by the clamped kv index_map in the wrapper.

    @pl.when(below_diag)
    def _unmasked_step():
        online_softmax_update(scores())

    @pl.when(on_diag)
    def _diagonal_step():
        s = scores()
        row = q_start + lax.broadcasted_iota(jnp.int32, (tq, tk), 0)
        col = k_start + lax.broadcasted_iota(jnp.int32, (tq, tk), 1)
        s = jnp.where((col <= row)[None, :, :], s, NEG_INF)
        online_softmax_update(s)

    @pl.when(ki == nk - 1)
    def _finalize():
        # Exact reciprocal: runs once per q tile, essentially free.
        inv_l = pl.reciprocal(l_sc[...], approx=False)       # (H, TQ, 1)
        # Merge the normalized heads once into a lane-dense (TQ, C) buffer ...
        for h in range(n_head):
            lo = h * head_dim
            y_sc[:, lo:lo + head_dim] = acc_sc[h] * inv_l[h]
        # ... then a single K=C matmul (fills the MXU contraction depth instead
        # of H matmuls with K=D), fused with the c_proj bias add.
        out = jnp.dot(y_sc[...].astype(compute_dtype), wp_ref[...],
                      preferred_element_type=jnp.float32)
        o_ref[...] = (out + bp_ref[...]).astype(o_ref.dtype)


# ----------------------------------- wrapper -----------------------------------------

def causal_self_attention(x, params, n_head, compute_dtype=jnp.bfloat16,
                          out_dtype=jnp.bfloat16):
    B, T, C = x.shape
    assert C % n_head == 0
    D = C // n_head
    scale = 1.0 / math.sqrt(D)

    w_attn = params['w_attn'].astype(compute_dtype)          # (C, 3C)
    b_attn = params['b_attn'].astype(jnp.float32)            # (1, 3C)
    w_proj = params['w_proj'].astype(compute_dtype)          # (C, C)
    b_proj = params['b_proj'].astype(jnp.float32)            # (1, C)

    # ---------------- kernel 1: QKV projection + head split ----------------
    tm = _choose_tile(T)
    tkc = _choose_tile(C, (512, 256, 128))    # K tile over C (falls back to C)
    nkc = C // tkc
    qkv_block_bytes = (tm * tkc * 4                 # x block (f32)
                       + tkc * 3 * C * 2            # weight block (bf16)
                       + 3 * C * 4                  # bias
                       + 3 * n_head * tm * D * 2    # q/k/v output blocks (bf16)
                       + 2 * tm * 3 * C * 4)        # f32 accumulator + intermediate

    qkv_shape = jax.ShapeDtypeStruct((B, n_head, T, D), compute_dtype)
    q, k, v = pl.pallas_call(
        functools.partial(_qkv_proj_kernel, n_head=n_head, head_dim=D),
        out_shape=(qkv_shape, qkv_shape, qkv_shape),
        grid_spec=pltpu.PrefetchScalarGridSpec(
            num_scalar_prefetch=0,
            grid=(B, T // tm, nkc),
            in_specs=[
                pl.BlockSpec((None, tm, tkc), lambda b, i, kc: (b, i, kc)),
                pl.BlockSpec((tkc, 3 * C), lambda b, i, kc: (kc, 0)),
                pl.BlockSpec((1, 3 * C), lambda b, i, kc: (0, 0)),
            ],
            out_specs=[
                pl.BlockSpec((None, n_head, tm, D), lambda b, i, kc: (b, 0, i, 0)),
                pl.BlockSpec((None, n_head, tm, D), lambda b, i, kc: (b, 0, i, 0)),
                pl.BlockSpec((None, n_head, tm, D), lambda b, i, kc: (b, 0, i, 0)),
            ],
            scratch_shapes=[pltpu.VMEM((tm, 3 * C), jnp.float32)],
        ),
        compiler_params=pltpu.CompilerParams(
            dimension_semantics=("parallel", "parallel", "arbitrary"),
            vmem_limit_bytes=_vmem_limit(qkv_block_bytes)),
        cost_estimate=pl.CostEstimate(
            flops=2 * B * T * C * 3 * C,
            transcendentals=0,
            bytes_accessed=B * T * C * 4 + C * 3 * C * 2 + 3 * B * T * C * 2),
    )(x, w_attn, b_attn)

    # -------- kernel 2: flash attention + output projection (fused) --------
    tq = _choose_attn_tile(T, n_head)
    tk = tq
    nq, nk = T // tq, T // tk
    assert n_head * tq * tk * 4 <= (16 << 20), (
        "attention tile too large for VMEM; pad T to a friendlier multiple")
    # TODO(synk): pad T when no preferred tile divides it (large prime-ish T).

    def q_index(b, qi, ki):
        return (b, 0, qi, 0)

    def kv_index(b, qi, ki):
        # Clamp fully-masked kv tiles back to the diagonal tile: the block
        # index is then unchanged between consecutive steps, so Pallas elides
        # the DMA (no wasted HBM traffic above the diagonal).
        return (b, 0, jnp.minimum(ki, (qi * tq + tq - 1) // tk), 0)

    flash_block_bytes = (n_head * tq * D * 2 + 2 * n_head * tk * D * 2
                         + C * C * 2 + C * 4 + tq * C * 2
                         + n_head * tq * (D + 2) * 4 + tq * C * 4
                         + 3 * n_head * tq * tk * 4)   # s/p intermediates
    out = pl.pallas_call(
        functools.partial(_flash_attn_proj_kernel, n_head=n_head, head_dim=D,
                          tq=tq, tk=tk, scale=scale,
                          compute_dtype=compute_dtype),
        out_shape=jax.ShapeDtypeStruct((B, T, C), out_dtype),
        grid_spec=pltpu.PrefetchScalarGridSpec(
            num_scalar_prefetch=0,
            grid=(B, nq, nk),
            in_specs=[
                pl.BlockSpec((None, n_head, tq, D), q_index),
                pl.BlockSpec((None, n_head, tk, D), kv_index),
                pl.BlockSpec((None, n_head, tk, D), kv_index),
                pl.BlockSpec((C, C), lambda b, qi, ki: (0, 0)),
                pl.BlockSpec((1, C), lambda b, qi, ki: (0, 0)),
            ],
            out_specs=pl.BlockSpec((None, tq, C), lambda b, qi, ki: (b, qi, 0)),
            scratch_shapes=[
                pltpu.VMEM((n_head, tq, 1), jnp.float32),   # running max m
                pltpu.VMEM((n_head, tq, 1), jnp.float32),   # running sum l
                pltpu.VMEM((n_head, tq, D), jnp.float32),   # per-head accumulator
                pltpu.VMEM((tq, C), jnp.float32),           # merged-head buffer
            ],
        ),
        compiler_params=pltpu.CompilerParams(
            dimension_semantics=("parallel", "parallel", "arbitrary"),
            vmem_limit_bytes=_vmem_limit(flash_block_bytes)),
        cost_estimate=pl.CostEstimate(
            # QK^T and PV matmuls (~halved by causal skipping) + c_proj.
            flops=(2 * 2 * B * n_head * T * T * D) // 2 + 2 * B * T * C * C,
            transcendentals=B * n_head * T * T // 2,
            bytes_accessed=(3 * B * n_head * T * D * 2 + B * T * C * 2
                            + C * C * 2 + C * 4)),
    )(q, k, v, w_proj, b_proj)
    return out


# ------------------------------ pure-JAX reference ------------------------------------

def causal_self_attention_ref(x, params, n_head):
    B, T, C = x.shape
    D = C // n_head
    qkv = x @ params['w_attn'] + params['b_attn']
    q, k, v = jnp.split(qkv, 3, axis=-1)
    q = q.reshape(B, T, n_head, D).transpose(0, 2, 1, 3)
    k = k.reshape(B, T, n_head, D).transpose(0, 2, 1, 3)
    v = v.reshape(B, T, n_head, D).transpose(0, 2, 1, 3)
    s = jnp.einsum('bhqd,bhkd->bhqk', q, k) / math.sqrt(D)
    mask = jnp.tril(jnp.ones((T, T), dtype=bool))
    s = jnp.where(mask, s, -jnp.inf)
    p = jax.nn.softmax(s, axis=-1)
    y = jnp.einsum('bhqk,bhkd->bhqd', p, v)
    y = y.transpose(0, 2, 1, 3).reshape(B, T, C)
    return y @ params['w_proj'] + params['b_proj']


# ------------------------------------- main --------------------------------------------

if __name__ == "__main__":
    def make_params(key, C):
        k1, k2, kb1, kb2 = jax.random.split(key, 4)
        std = 0.02
        return {
            'w_attn': std * jax.random.normal(k1, (C, 3 * C), jnp.float32),
            'b_attn': std * jax.random.normal(kb1, (1, 3 * C), jnp.float32),
            'w_proj': std * jax.random.normal(k2, (C, C), jnp.float32),
            'b_proj': std * jax.random.normal(kb2, (1, C), jnp.float32),
        }

    key = jax.random.PRNGKey(0)
    configs = [
        (2, 8, 32, 4),      # toy: single tile per axis
        (2, 512, 128, 4),   # mid: single q/kv tile, diagonal-mask path
        (2, 512, 384, 6),   # K-tiled QKV projection + multi-kv-tile flash loop
    ]
    for (B, T, C, H) in configs:
        key, kx, kp = jax.random.split(key, 3)
        x = jax.random.normal(kx, (B, T, C), dtype=jnp.float32)
        params = make_params(kp, C)

        out = jax.block_until_ready(causal_self_attention(x, params, n_head=H))
        ref = causal_self_attention_ref(x, params, n_head=H)

        assert out.shape == (B, T, C)
        out_f32 = out.astype(jnp.float32)
        err = jnp.max(jnp.abs(out_f32 - ref))
        # bf16 matmul operands + bf16 output -> loosened tolerance.
        assert jnp.allclose(out_f32, ref, rtol=2e-2, atol=2e-2), (
            f"mismatch at config {(B, T, C, H)}: max abs err {err}")

    print("KERNEL_OK")
</pallas_src>

<mosaic_0001>
module attributes {stable_mosaic.version = 11 : i64} {
  func.func @_qkv_proj_kernel(%arg0: i32, %arg1: i32, %arg2: i32, %arg3: memref<1x8x32xf32, #tpu.memory_space<vmem>>, %arg4: memref<32x96xbf16, #tpu.memory_space<vmem>>, %arg5: memref<1x96xf32, #tpu.memory_space<vmem>>, %arg6: memref<1x4x8x8xbf16, #tpu.memory_space<vmem>>, %arg7: memref<1x4x8x8xbf16, #tpu.memory_space<vmem>>, %arg8: memref<1x4x8x8xbf16, #tpu.memory_space<vmem>>, %arg9: memref<8x96xf32, #tpu.memory_space<vmem>>) attributes {dimension_semantics = [#tpu.dimension_semantics<parallel>, #tpu.dimension_semantics<parallel>, #tpu.dimension_semantics<arbitrary>], iteration_bounds = array<i64: 2, 1, 1>, scalar_prefetch = 0 : i64, scratch_operands = 1 : i64, tpu.core_type = #tpu.core_type<tc>, window_params = [{transform_indices = @transform_0, window_bounds = array<i64: 1, 8, 32>}, {transform_indices = @transform_1, window_bounds = array<i64: 32, 96>}, {pipeline_mode = #tpu.pipeline_mode<synchronous>, transform_indices = @transform_2, window_bounds = array<i64: 1, 96>}, {transform_indices = @transform_3, window_bounds = array<i64: 1, 4, 8, 8>}, {transform_indices = @transform_4, window_bounds = array<i64: 1, 4, 8, 8>}, {transform_indices = @transform_5, window_bounds = array<i64: 1, 4, 8, 8>}]} {
    %c0_i32 = arith.constant 0 : i32
    %0 = arith.cmpi eq, %arg2, %c0_i32 : i32
    %1 = arith.extui %0 : i1 to i32
    %c0_i32_0 = arith.constant 0 : i32
    %2 = arith.cmpi ne, %1, %c0_i32_0 : i32
    scf.if %2 {
      %cst_11 = arith.constant 0.000000e+00 : f32
      %14 = vector.broadcast %cst_11 : f32 to vector<8x96xf32>
      %c0_12 = arith.constant 0 : index
      %c0_13 = arith.constant 0 : index
      %15 = vector.load %arg9[%c0_12, %c0_13] : memref<8x96xf32, #tpu.memory_space<vmem>>, vector<8x96xf32>
      tpu.vector_store %arg9[%c0_12, %c0_13], %14 {strides = array<i32>} : memref<8x96xf32, #tpu.memory_space<vmem>>, vector<8x96xf32>,
    } else {
    }
    %c0 = arith.constant 0 : index
    %c0_1 = arith.constant 0 : index
    %c0_2 = arith.constant 0 : index
    %3 = vector.load %arg3[%c0, %c0_1, %c0_2] : memref<1x8x32xf32, #tpu.memory_space<vmem>>, vector<1x8x32xf32>
    %4 = vector.shape_cast %3 : vector<1x8x32xf32> to vector<8x32xf32>
    %5 = arith.truncf %4 : vector<8x32xf32> to vector<8x32xbf16>
    %c0_3 = arith.constant 0 : index
    %c0_4 = arith.constant 0 : index
    %6 = vector.load %arg9[%c0_3, %c0_4] : memref<8x96xf32, #tpu.memory_space<vmem>>, vector<8x96xf32>
    %c0_5 = arith.constant 0 : index
    %c0_6 = arith.constant 0 : index
    %7 = vector.load %arg4[%c0_5, %c0_6] : memref<32x96xbf16, #tpu.memory_space<vmem>>, vector<32x96xbf16>
    %cst = arith.constant dense<0.000000e+00> : vector<8x96xf32>
    %8 = tpu.matmul %5, %7, %cst {dimension_numbers = #tpu.dot_dimension_numbers<[1], [0], [0], [1], [0, 0, 1, 1], [], []>} : vector<8x32xbf16>, vector<32x96xbf16>, vector<8x96xf32> -> vector<8x96xf32>
    %9 = arith.addf %6, %8 : vector<8x96xf32>
    %c0_7 = arith.constant 0 : index
    %c0_8 = arith.constant 0 : index
    %10 = vector.load %arg9[%c0_7, %c0_8] : memref<8x96xf32, #tpu.memory_space<vmem>>, vector<8x96xf32>
    tpu.vector_store %arg9[%c0_7, %c0_8], %9 {strides = array<i32>} : memref<8x96xf32, #tpu.memory_space<vmem>>, vector<8x96xf32>,
    %c0_i32_9 = arith.constant 0 : i32
    %11 = arith.cmpi eq, %arg2, %c0_i32_9 : i32
    %12 = arith.extui %11 : i1 to i32
    %c0_i32_10 = arith.constant 0 : i32
    %13 = arith.cmpi ne, %12, %c0_i32_10 : i32
    scf.if %13 {
      %c0_11 = arith.constant 0 : index
      %c0_12 = arith.constant 0 : index
      %14 = vector.load %arg9[%c0_11, %c0_12] : memref<8x96xf32, #tpu.memory_space<vmem>>, vector<8x96xf32>
      %c0_13 = arith.constant 0 : index
      %c0_14 = arith.constant 0 : index
      %15 = vector.load %arg5[%c0_13, %c0_14] : memref<1x96xf32, #tpu.memory_space<vmem>>, vector<1x96xf32>
      %16 = vector.broadcast %15 : vector<1x96xf32> to vector<8x96xf32>
      %17 = arith.addf %14, %16 : vector<8x96xf32>
      %18 = vector.extract_strided_slice %17 {offsets = [0, 0], sizes = [8, 8], strides = [1, 1]} : vector<8x96xf32> to vector<8x8xf32>
      %19 = arith.truncf %18 : vector<8x8xf32> to vector<8x8xbf16>
      %c0_15 = arith.constant 0 : index
      %c0_16 = arith.constant 0 : index
      %c0_17 = arith.constant 0 : index
      %c0_18 = arith.constant 0 : index
      %20 = vector.load %arg6[%c0_15, %c0_16, %c0_17, %c0_18] : memref<1x4x8x8xbf16, #tpu.memory_space<vmem>>, vector<1x1x8x8xbf16>
      %21 = vector.shape_cast %20 : vector<1x1x8x8xbf16> to vector<8x8xbf16>
      %22 = vector.shape_cast %19 : vector<8x8xbf16> to vector<1x1x8x8xbf16>
      tpu.vector_store %arg6[%c0_15, %c0_16, %c0_17, %c0_18], %22 {strides = array<i32>} : memref<1x4x8x8xbf16, #tpu.memory_space<vmem>>, vector<1x1x8x8xbf16>,
      %23 = vector.extract_strided_slice %17 {offsets = [0, 32], sizes = [8, 8], strides = [1, 1]} : vector<8x96xf32> to vector<8x8xf32>
      %24 = arith.truncf %23 : vector<8x8xf32> to vector<8x8xbf16>
      %c0_19 = arith.constant 0 : index
      %c0_20 = arith.constant 0 : index
      %c0_21 = arith.constant 0 : index
      %c0_22 = arith.constant 0 : index
      %25 = vector.load %arg7[%c0_19, %c0_20, %c0_21, %c0_22] : memref<1x4x8x8xbf16, #tpu.memory_space<vmem>>, vector<1x1x8x8xbf16>
      %26 = vector.shape_cast %25 : vector<1x1x8x8xbf16> to vector<8x8xbf16>
      %27 = vector.shape_cast %24 : vector<8x8xbf16> to vector<1x1x8x8xbf16>
      tpu.vector_store %arg7[%c0_19, %c0_20, %c0_21, %c0_22], %27 {strides = array<i32>} : memref<1x4x8x8xbf16, #tpu.memory_space<vmem>>, vector<1x1x8x8xbf16>,
      %28 = vector.extract_strided_slice %17 {offsets = [0, 64], sizes = [8, 8], strides = [1, 1]} : vector<8x96xf32> to vector<8x8xf32>
      %29 = arith.truncf %28 : vector<8x8xf32> to vector<8x8xbf16>
      %c0_23 = arith.constant 0 : index
      %c0_24 = arith.constant 0 : index
      %c0_25 = arith.constant 0 : index
      %c0_26 = arith.constant 0 : index
      %30 = vector.load %arg8[%c0_23, %c0_24, %c0_25, %c0_26] : memref<1x4x8x8xbf16, #tpu.memory_space<vmem>>, vector<1x1x8x8xbf16>
      %31 = vector.shape_cast %30 : vector<1x1x8x8xbf16> to vector<8x8xbf16>
      %32 = vector.shape_cast %29 : vector<8x8xbf16> to vector<1x1x8x8xbf16>
      tpu.vector_store %arg8[%c0_23, %c0_24, %c0_25, %c0_26], %32 {strides = array<i32>} : memref<1x4x8x8xbf16, #tpu.memory_space<vmem>>, vector<1x1x8x8xbf16>,
      %33 = vector.extract_strided_slice %17 {offsets = [0, 8], sizes = [8, 8], strides = [1, 1]} : vector<8x96xf32> to vector<8x8xf32>
      %34 = arith.truncf %33 : vector<8x8xf32> to vector<8x8xbf16>
      %c0_27 = arith.constant 0 : index
      %c1 = arith.constant 1 : index
      %c0_28 = arith.constant 0 : index
      %c0_29 = arith.constant 0 : index
      %35 = vector.load %arg6[%c0_27, %c1, %c0_28, %c0_29] : memref<1x4x8x8xbf16, #tpu.memory_space<vmem>>, vector<1x1x8x8xbf16>
      %36 = vector.shape_cast %35 : vector<1x1x8x8xbf16> to vector<8x8xbf16>
      %37 = vector.shape_cast %34 : vector<8x8xbf16> to vector<1x1x8x8xbf16>
      tpu.vector_store %arg6[%c0_27, %c1, %c0_28, %c0_29], %37 {strides = array<i32>} : memref<1x4x8x8xbf16, #tpu.memory_space<vmem>>, vector<1x1x8x8xbf16>,
      %38 = vector.extract_strided_slice %17 {offsets = [0, 40], sizes = [8, 8], strides = [1, 1]} : vector<8x96xf32> to vector<8x8xf32>
      %39 = arith.truncf %38 : vector<8x8xf32> to vector<8x8xbf16>
      %c0_30 = arith.constant 0 : index
      %c1_31 = arith.constant 1 : index
      %c0_32 = arith.constant 0 : index
      %c0_33 = arith.constant 0 : index
      %40 = vector.load %arg7[%c0_30, %c1_31, %c0_32, %c0_33] : memref<1x4x8x8xbf16, #tpu.memory_space<vmem>>, vector<1x1x8x8xbf16>
      %41 = vector.shape_cast %40 : vector<1x1x8x8xbf16> to vector<8x8xbf16>
      %42 = vector.shape_cast %39 : vector<8x8xbf16> to vector<1x1x8x8xbf16>
      tpu.vector_store %arg7[%c0_30, %c1_31, %c0_32, %c0_33], %42 {strides = array<i32>} : memref<1x4x8x8xbf16, #tpu.memory_space<vmem>>, vector<1x1x8x8xbf16>,
      %43 = vector.extract_strided_slice %17 {offsets = [0, 72], sizes = [8, 8], strides = [1, 1]} : vector<8x96xf32> to vector<8x8xf32>
      %44 = arith.truncf %43 : vector<8x8xf32> to vector<8x8xbf16>
      %c0_34 = arith.constant 0 : index
      %c1_35 = arith.constant 1 : index
      %c0_36 = arith.constant 0 : index
      %c0_37 = arith.constant 0 : index
      %45 = vector.load %arg8[%c0_34, %c1_35, %c0_36, %c0_37] : memref<1x4x8x8xbf16, #tpu.memory_space<vmem>>, vector<1x1x8x8xbf16>
      %46 = vector.shape_cast %45 : vector<1x1x8x8xbf16> to vector<8x8xbf16>
      %47 = vector.shape_cast %44 : vector<8x8xbf16> to vector<1x1x8x8xbf16>
      tpu.vector_store %arg8[%c0_34, %c1_35, %c0_36, %c0_37], %47 {strides = array<i32>} : memref<1x4x8x8xbf16, #tpu.memory_space<vmem>>, vector<1x1x8x8xbf16>,
      %48 = vector.extract_strided_slice %17 {offsets = [0, 16], sizes = [8, 8], strides = [1, 1]} : vector<8x96xf32> to vector<8x8xf32>
      %49 = arith.truncf %48 : vector<8x8xf32> to vector<8x8xbf16>
      %c0_38 = arith.constant 0 : index
      %c2 = arith.constant 2 : index
      %c0_39 = arith.constant 0 : index
      %c0_40 = arith.constant 0 : index
      %50 = vector.load %arg6[%c0_38, %c2, %c0_39, %c0_40] : memref<1x4x8x8xbf16, #tpu.memory_space<vmem>>, vector<1x1x8x8xbf16>
      %51 = vector.shape_cast %50 : vector<1x1x8x8xbf16> to vector<8x8xbf16>
      %52 = vector.shape_cast %49 : vector<8x8xbf16> to vector<1x1x8x8xbf16>
      tpu.vector_store %arg6[%c0_38, %c2, %c0_39, %c0_40], %52 {strides = array<i32>} : memref<1x4x8x8xbf16, #tpu.memory_space<vmem>>, vector<1x1x8x8xbf16>,
      %53 = vector.extract_strided_slice %17 {offsets = [0, 48], sizes = [8, 8], strides = [1, 1]} : vector<8x96xf32> to vector<8x8xf32>
      %54 = arith.truncf %53 : vector<8x8xf32> to vector<8x8xbf16>
      %c0_41 = arith.constant 0 : index
      %c2_42 = arith.constant 2 : index
      %c0_43 = arith.constant 0 : index
      %c0_44 = arith.constant 0 : index
      %55 = vector.load %arg7[%c0_41, %c2_42, %c0_43, %c0_44] : memref<1x4x8x8xbf16, #tpu.memory_space<vmem>>, vector<1x1x8x8xbf16>
      %56 = vector.shape_cast %55 : vector<1x1x8x8xbf16> to vector<8x8xbf16>
      %57 = vector.shape_cast %54 : vector<8x8xbf16> to vector<1x1x8x8xbf16>
      tpu.vector_store %arg7[%c0_41, %c2_42, %c0_43, %c0_44], %57 {strides = array<i32>} : memref<1x4x8x8xbf16, #tpu.memory_space<vmem>>, vector<1x1x8x8xbf16>,
      %58 = vector.extract_strided_slice %17 {offsets = [0, 80], sizes = [8, 8], strides = [1, 1]} : vector<8x96xf32> to vector<8x8xf32>
      %59 = arith.truncf %58 : vector<8x8xf32> to vector<8x8xbf16>
      %c0_45 = arith.constant 0 : index
      %c2_46 = arith.constant 2 : index
      %c0_47 = arith.constant 0 : index
      %c0_48 = arith.constant 0 : index
      %60 = vector.load %arg8[%c0_45, %c2_46, %c0_47, %c0_48] : memref<1x4x8x8xbf16, #tpu.memory_space<vmem>>, vector<1x1x8x8xbf16>
      %61 = vector.shape_cast %60 : vector<1x1x8x8xbf16> to vector<8x8xbf16>
      %62 = vector.shape_cast %59 : vector<8x8xbf16> to vector<1x1x8x8xbf16>
      tpu.vector_store %arg8[%c0_45, %c2_46, %c0_47, %c0_48], %62 {strides = array<i32>} : memref<1x4x8x8xbf16, #tpu.memory_space<vmem>>, vector<1x1x8x8xbf16>,
      %63 = vector.extract_strided_slice %17 {offsets = [0, 24], sizes = [8, 8], strides = [1, 1]} : vector<8x96xf32> to vector<8x8xf32>
      %64 = arith.truncf %63 : vector<8x8xf32> to vector<8x8xbf16>
      %c0_49 = arith.constant 0 : index
      %c3 = arith.constant 3 : index
      %c0_50 = arith.constant 0 : index
      %c0_51 = arith.constant 0 : index
      %65 = vector.load %arg6[%c0_49, %c3, %c0_50, %c0_51] : memref<1x4x8x8xbf16, #tpu.memory_space<vmem>>, vector<1x1x8x8xbf16>
      %66 = vector.shape_cast %65 : vector<1x1x8x8xbf16> to vector<8x8xbf16>
      %67 = vector.shape_cast %64 : vector<8x8xbf16> to vector<1x1x8x8xbf16>
      tpu.vector_store %arg6[%c0_49, %c3, %c0_50, %c0_51], %67 {strides = array<i32>} : memref<1x4x8x8xbf16, #tpu.memory_space<vmem>>, vector<1x1x8x8xbf16>,
      %68 = vector.extract_strided_slice %17 {offsets = [0, 56], sizes = [8, 8], strides = [1, 1]} : vector<8x96xf32> to vector<8x8xf32>
      %69 = arith.truncf %68 : vector<8x8xf32> to vector<8x8xbf16>
      %c0_52 = arith.constant 0 : index
      %c3_53 = arith.constant 3 : index
      %c0_54 = arith.constant 0 : index
      %c0_55 = arith.constant 0 : index
      %70 = vector.load %arg7[%c0_52, %c3_53, %c0_54, %c0_55] : memref<1x4x8x8xbf16, #tpu.memory_space<vmem>>, vector<1x1x8x8xbf16>
      %71 = vector.shape_cast %70 : vector<1x1x8x8xbf16> to vector<8x8xbf16>
      %72 = vector.shape_cast %69 : vector<8x8xbf16> to vector<1x1x8x8xbf16>
      tpu.vector_store %arg7[%c0_52, %c3_53, %c0_54, %c0_55], %72 {strides = array<i32>} : memref<1x4x8x8xbf16, #tpu.memory_space<vmem>>, vector<1x1x8x8xbf16>,
      %73 = vector.extract_strided_slice %17 {offsets = [0, 88], sizes = [8, 8], strides = [1, 1]} : vector<8x96xf32> to vector<8x8xf32>
      %74 = arith.truncf %73 : vector<8x8xf32> to vector<8x8xbf16>
      %c0_56 = arith.constant 0 : index
      %c3_57 = arith.constant 3 : index
      %c0_58 = arith.constant 0 : index
      %c0_59 = arith.constant 0 : index
      %75 = vector.load %arg8[%c0_56, %c3_57, %c0_58, %c0_59] : memref<1x4x8x8xbf16, #tpu.memory_space<vmem>>, vector<1x1x8x8xbf16>
      %76 = vector.shape_cast %75 : vector<1x1x8x8xbf16> to vector<8x8xbf16>
      %77 = vector.shape_cast %74 : vector<8x8xbf16> to vector<1x1x8x8xbf16>
      tpu.vector_store %arg8[%c0_56, %c3_57, %c0_58, %c0_59], %77 {strides = array<i32>} : memref<1x4x8x8xbf16, #tpu.memory_space<vmem>>, vector<1x1x8x8xbf16>,
    } else {
    }
    return
  }
  func.func @transform_0(%arg0: i32, %arg1: i32, %arg2: i32) -> (i32, i32, i32) {
    %c0_i32 = arith.constant 0 : i32
    return %arg0, %arg1, %arg2 : i32, i32, i32
  }
  func.func @transform_1(%arg0: i32, %arg1: i32, %arg2: i32) -> (i32, i32) {
    %c0_i32 = arith.constant 0 : i32
    %c0_i32_0 = arith.constant 0 : i32
    return %arg2, %c0_i32 : i32, i32
  }
  func.func @transform_2(%arg0: i32, %arg1: i32, %arg2: i32) -> (i32, i32) {
    %c0_i32 = arith.constant 0 : i32
    %c0_i32_0 = arith.constant 0 : i32
    %c0_i32_1 = arith.constant 0 : i32
    return %c0_i32, %c0_i32_0 : i32, i32
  }
  func.func @transform_3(%arg0: i32, %arg1: i32, %arg2: i32) -> (i32, i32, i32, i32) {
    %c0_i32 = arith.constant 0 : i32
    %c0_i32_0 = arith.constant 0 : i32
    %c0_i32_1 = arith.constant 0 : i32
    return %arg0, %c0_i32, %arg1, %c0_i32_0 : i32, i32, i32, i32
  }
  func.func @transform_4(%arg0: i32, %arg1: i32, %arg2: i32) -> (i32, i32, i32, i32) {
    %c0_i32 = arith.constant 0 : i32
    %c0_i32_0 = arith.constant 0 : i32
    %c0_i32_1 = arith.constant 0 : i32
    return %arg0, %c0_i32, %arg1, %c0_i32_0 : i32, i32, i32, i32
  }
  func.func @transform_5(%arg0: i32, %arg1: i32, %arg2: i32) -> (i32, i32, i32, i32) {
    %c0_i32 = arith.constant 0 : i32
    %c0_i32_0 = arith.constant 0 : i32
    %c0_i32_1 = arith.constant 0 : i32
    return %arg0, %c0_i32, %arg1, %c0_i32_0 : i32, i32, i32, i32
  }
}

</mosaic_0001>

<bundles_post_ra>
// kernel: tpu_custom_call.1
= control target key start
LH: loop header
LB: loop body
LE: loop exit
PB: predicated region body
PF: predicated region fallthrough
CT: control target
= control target key end

     0   :  { %s1374_s0 = inlined_call_operand.hbm [shape: f32[2,8,32], index: 0, kind: input, shape index: {}]   ;;  %s1375_s1 = inlined_call_operand.hbm [shape: bf16[32,96], index: 1, kind: input, shape index: {}]   ;;  %s1376_s2 = inlined_call_operand.vmem [shape: f32[1,96], index: 2, kind: input, shape index: {}]   ;;  %s1377_s3 = inlined_call_operand.hbm [shape: bf16[2,4,8,8], index: 3, kind: output, shape index: {0}]   ;;  %s1378_s4 = inlined_call_operand.hbm [shape: bf16[2,4,8,8], index: 4, kind: output, shape index: {1}]   ;;  %s1379_s5 = inlined_call_operand.hbm [shape: bf16[2,4,8,8], index: 5, kind: output, shape index: {2}]  }
   0x1   :  { %1383 = sst [smem:[#allocation17_spill]] %s1375_s1 }
   0x2   :  { %11 = vsyncpa [#allocation4], 0 }
   0x3   :  { %13 = vsyncpa [#allocation4 + $0x1], 0 }
   0x4   :  { %14 = vsyncpa [#allocation7], 0 }
   0x5   :  { %15 = vsyncpa [#allocation5], 0 }
   0x6   :  { %17 = vsyncpa [#allocation5 + $0x1], 0 }
   0x7   :  { %18 = vsyncpa [#allocation10], 0 }
   0x8   :  { %20 = vsyncpa [#allocation10 + $0x1], 0  ;;  %s1082_s18 = smov 0   ;;  %s1084_s19 = smov 0  }
   0x9   :  { %s1086_s20 = smov 0   ;;  %s1088_s21 = smov 0  }
   0xa   :  { %s1090_s22 = smov 0   ;;  %s1092_s23 = smov 0  }
   0xb LB: > { %s1113_s24 = sadd.s32 4294967295, %s1029_s23   ;;  %s1380_s25 = sadd.s32 4294967294, %s1029_s23   ;;  %s1029_s23 = sphi %s1092_s23, %s26_s23   ;;  %s1025_s22 = sphi %s1090_s22, %s1404_s22   ;;  %s1021_s21 = sphi %s1088_s21, %s1403_s21   ;;  %s1017_s20 = sphi %s1086_s20, %s1402_s20   ;;  %s1013_s19 = sphi %s1084_s19, %s1401_s19   ;;  %s1009_s18 = sphi %s1082_s18, %s1400_s18  }
   0xc   : > { %p69_p0 = scmp.ne.s32.totalorder %s1013_s19, %s1009_s18  ;;  %p1382_p1 = scmp.eq.s32.totalorder %s1113_s24, 0 }
   0xd   : > { %p148_p3 = scmp.eq.s32.totalorder %s1380_s25, 1  ;;  %p683_p5 = scmp.ge.s32.totalorder %s1029_s23, 1 }
   0xe   : > { %p1124_p4 = por %p1382_p1, %p69_p0  ;;  %p211_p7 = scmp.lt.s32.totalorder %s1029_s23, 3 }
   0xf   : > { %p1129_p6 = por %p148_p3, %p69_p0  ;;  %s1031_s29 = smov [#allocation6]  }
  0x10   : > { %p1134_p8 = pnand %p683_p5, %p211_p7  ;;  %s226_s30 = sshll.u32 %s1031_s29, 4  ;;  %s227_s30 = int_to_ptr.vmem [resolvable:$true] %s226_s30 }
  0x11   : > { %s1385_s27 = scalar_select %p1129_p6, 1, 0 }
  0x12   : > { %p746_p9 = pneg %p1134_p8  ;;  %s45_s7 = sadd.s32 1, %s1025_s22 }
  0x13   : > { %s846_s8 = scalar_lea.vmem %s227_s30, 256  ;;  %p854_p5 = scmp.lt.s32.totalorder %s227_s30, %s227_s30 }
  0x14   : > { %p1143_p11 = pnand %p746_p9, %p1382_p1  ;;  %p847_p13 = scmp.ne.s32.totalorder %s227_s30, %s846_s8 }
  0x15   : > { %p855_p7 = scmp.lt.s32.totalorder %s846_s8, %s846_s8 }
  0x16   : > { %p837_p12 = pneg %p1143_p11 }
  0x17   : > { %p856_p2 = por %p855_p7, %p854_p5 }
  0x18   : > { %p849_p0 = pnand %p847_p13, %p837_p12 }
  0x1a   : > { %p850_p3 = pneg %p849_p0 }
  0x1c   : > { %p857_p6 = pnand %p856_p2, %p850_p3 }
  0x1e   : > { %860 = shalt.err (!%p857_p6)
}
  0x1f   : > { %s1032_s9 = smov 64   ;;  %s1033_s10 = smov 4  }
  0x20   : > { %s1388_s1 = sld [smem:[#allocation17_spill]]  ;;  %p47_p2 = scmp.ge.s32.totalorder %s45_s7, 2 }
  0x21   : > { %s56_s13 = sadd.s32 1, %s1017_s20  ;;  %p63_p6 = scmp.ne.s32.totalorder %s1017_s20, %s1013_s19 }
  0x22   : > { %p64_p9 = scmp.eq.s32.totalorder %s1029_s23, 0  ;;  %s1406_s7 = smov (%p47_p2, %s45_s7), 0 }
  0x23   : > { %1389 = sst [smem:[#allocation16_spill]] %s1406_s7  ;;  %p1391_p13 = scmp.eq.s32.totalorder %s1113_s24, 1 }
  0x24   : > { %p1161_p12 = por %p64_p9, %p63_p6  ;;  %s49_s16 = ssub.s32 %s1025_s22, %s1406_s7 }
  0x25   : > { %p1167_p0 = por %p1391_p13, %p63_p6  ;;  %p765_p3 = scmp.lt.s32.totalorder %s1029_s23, 2 }
  0x26   : > { %749 = dma.hbm_to_vmem [thread:$0]  (!%p1143_p11), %s1388_s1, 256, %s227_s30, [#allocation7], %s1032_s9, %s1032_s9, %s1033_s10  }
  0x27   : > { %p54_p11 = scmp.eq.s32.totalorder %s49_s16, 0  ;;  %s243_s17 = sand.u32 1, %s1017_s20  }
  0x28   : > { %s686_s29 = sshll.u32 %s243_s17, 3  ;;  %s687_s6 = sshll.u32 %s1025_s22, 7 }
  0x29   : > { %s1176_s30 = scalar_select %p54_p11, %s1017_s20, %s56_s13  }
  0x2a   : > { %s254_s10 = scalar_lea.hbm %s1374_s0, %s687_s6  ;;  %s247_s11 = scalar_lea.vmem [#allocation3], %s686_s29 }
  0x2b   : > { %s256_s12 = sshll.u32 %s247_s11, 4  ;;  %p1184_p5 = pnand %p765_p3, %p1161_p12  ;;  %s257_s12 = int_to_ptr.vmem [resolvable:$true] %s256_s12 }
  0x2c   : > { %s244_s1 = scalar_lea.sflag [#allocation4], %s243_s17  ;;  %s874_s16 = scalar_lea.vmem %s257_s12, 128 }
  0x2d   : > { %p863_p7 = pneg %p1184_p5  ;;  %p875_p2 = scmp.ne.s32.totalorder %s257_s12, %s874_s16 }
  0x2e   : > { %s1034_s13 = smov [#allocation3]  }
  0x2f   : > { %p877_p6 = pnand %p875_p2, %p863_p7  ;;  %s879_s7 = sshll.u32 %s1034_s13, 4  ;;  %s880_s7 = int_to_ptr.vmem [resolvable:$false] %s879_s7 }
  0x30   : > { %s881_s6 = scalar_lea.vmem %s880_s7, 256  ;;  %p882_p13 = scmp.lt.s32.totalorder %s257_s12, %s880_s7 }
  0x31   : > { %p878_p9 = pneg %p877_p6  ;;  %p883_p11 = scmp.lt.s32.totalorder %s881_s6, %s874_s16 }
  0x33   : > { %p884_p10 = por %p883_p11, %p882_p13 }
  0x35   : > { %p885_p1 = pnand %p884_p10, %p878_p9 }
  0x37   : > { %888 = shalt.err (!%p885_p1)
}
  0x38   : > { %753 = dma.hbm_to_vmem [thread:$0]  (!%p1184_p5), %s254_s10, 128, %s257_s12, %s244_s1  }
  0x39   : > { %265 = sbr.rel (%p1134_p8) target bundleno = 460 (0x1cc), region = 32  ;;  %s1195_s14 = sand.u32 (!%p1134_p8), 1, %s1013_s19  }
  0x3a   : > { %s689_s17 = sshll.u32 (!%p1134_p8), %s1195_s14, 3  ;;  %s268_s29 = scalar_lea.sflag (!%p1134_p8), [#allocation4], %s1195_s14 }
  0x3b   : > { %s271_s8 = scalar_lea.vmem (!%p1134_p8), [#allocation3], %s689_s17 }
  0x3e   : > { %992 = dma.done.wait (%p1124_p4), %s268_s29, 128  }
  0x3f   : > { %994 = vsyncadd (%p1124_p4), %s268_s29, 4294967168  ;;  %p1394_p1 = scmp.eq.s32.totalorder %s1113_s24, 0 }
  0x41   : > { %996 = dma.done.wait (%p1394_p1), [#allocation7], 256   ;;  %p1395_p10 = pmov %p1394_p1 }
  0x42   : > { %vm318_vm0 = vcmask 785408   ;;  %v1035_v0 = vmov 0.0   ;;  %vm1036_vm1 = vmmov 0   ;;  %v833_v1 = vld [vmem:[#allocation6 + $0x8] sm:$0xff]   ;;  %v834_v2 = vld [vmem:[#allocation6] sm:$0xff]   ;;  %v320_v3 = vld [vmem:[%s271_s8] sm:$0xff] }
  0x43   : > { %998 = vsyncadd (%p1395_p10), [#allocation7], 4294967040  ;;  %319 = vst.msk [vmem:[#allocation2] sm:$0xff] %vm318_vm0, %v1035_v0  ;;  %726 = vmatprep.subr.bf16.mxu0 %v1035_v0  ;;  %730 = vmatprep.mubr.msk.bf16.mxu0 %vm1036_vm1, %v1035_v0  ;;  %v321_v4 = vpack.c.bf16 %v320_v3, %v320_v3  ;;  %vm339_vm2 = vcmask 261120   ;;  %v697_v11 = vld [vmem:[%s1376_s2] ss:$0 sm:$0xff] }
  0x44   : > { %727 = vmatpush3.bf16.msra.mxu0 %v833_v1  ;;  %s1213_s26 = sshll.u32 %s1195_s14, 4  ;;  %vm399_vm3 = vcmask 60416   ;;  %s1037_s28 = smov 80  }
  0x45   : > { %728 = vmatprep.subr.bf16.mxu0 %v1035_v0  ;;  %s1038_s7 = smov 96   ;;  %s1216_s9 = scalar_lea.vmem [#allocation8], %s1213_s26 }
  0x46   : > { %s1039_s10 = smov 72   ;;  %s1040_s11 = smov 88  }
  0x47   : > { %s1041_s12 = smov 120   ;;  %s1042_s16 = smov 64  }
  0x48   : > { %729 = vmatpush3.bf16.msra.mxu0 %v834_v2  ;;  %s1043_s13 = smov 112   ;;  %s1044_s6 = smov 56  }
  0x49   : > { %s1045_s17 = smov 104   ;;  %s1046_s29 = smov 48  }
  0x4a   : > { %v322_v5 = vld [vmem:[#allocation2] sm:$0xff]  ;;  %s1047_s8 = smov 40   ;;  %s304_s1 = scalar_lea.vmem [#allocation9], %s1213_s26 }
  0x4b   : > { %731 = vmatmul.mubr.msk.bf16.vlgmr.msra.gmra.mxu0 %vm339_vm2, %v321_v4  ;;  %s499_s25 = sshll.u32 %s304_s1, 4  ;;  %s1228_s25 = int_to_ptr.vmem [resolvable:$true] %s499_s25 }
 0x10b   : > { %v377_v6 = vpop.f32.mrf.mxu0 }
 0x10c   : > { %v383_v7 = vadd.f32 %v377_v6, %v322_v5 }
 0x10d   : > { %v732_v8 = vpop.f32.mrf.mxu0 }
 0x10e   : > { %385 = vst.msk [vmem:[#allocation2] sm:$0xff] %vm318_vm0, %v383_v7 }
 0x10f   : > { %v380_v9 = vpop.f32.mrf.mxu0 }
 0x111   : > { %v733_v10 = vpop.f32.mrf.mxu0 }
 0x115   : > { %v389_v12 = vld [vmem:[#allocation2] sm:$0xff] }
 0x116   : > { %v397_v13 = vadd.f32 %v697_v11, %v389_v12 }
 0x118   : > { %v398_v14 = vpack.c.bf16 %v397_v13, %v397_v13 }
 0x11a   : > { %432 = vrot.lane.b32.xlu1 %v398_v14, %s1037_s28  ;;  %404 = vrot.lane.b32.xlu0 %v398_v14, %s1038_s7  ;;  %400 = vst.msk [vmem:[%s1216_s9] sm:$0xf] %vm399_vm3, %v398_v14  ;;  %s462_s28 = sand.u32 1, %s1113_s24   ;;  %s1224_s7 = sshll.u32 %s1021_s21, 8 }
 0x11b   : > { %s1238_s21 = scalar_lea.sflag [#allocation10], %s462_s28  ;;  %s889_s24 = scalar_lea.vmem %s1228_s25, 256 }
 0x11c   : > { %p890_p4 = scmp.ne.s32.totalorder %s1228_s25, %s889_s24 }
 0x11e   : > { %447 = vrot.lane.b32.xlu1 %v398_v14, %s1039_s10  ;;  %417 = vrot.lane.b32.xlu0 %v398_v14, %s1040_s11  ;;  %p891_p8 = pnand %p890_p4, %p1167_p0 }
 0x120   : > { %p892_p12 = pneg %p891_p8 }
 0x122   : > { %412 = vrot.lane.b32.xlu1 %v398_v14, %s1041_s12  ;;  %408 = vrot.lane.b32.xlu0 %v398_v14, %s1042_s16  ;;  %s1234_s12 = scalar_lea.hbm %s1378_s4, %s1224_s7 }
 0x126   : > { %427 = vrot.lane.b32.xlu1 %v398_v14, %s1043_s13  ;;  %422 = vrot.lane.b32.xlu0 %v398_v14, %s1044_s6  ;;  %s1048_s13 = smov [#allocation9]  }
 0x127   : > { %s893_s6 = sshll.u32 %s1048_s13, 4  ;;  %s894_s6 = int_to_ptr.vmem [resolvable:$false] %s893_s6 }
 0x128   : > { %p896_p3 = scmp.lt.s32.totalorder %s1228_s25, %s894_s6 }
 0x12a   : > { %442 = vrot.lane.b32.xlu1 %v398_v14, %s1045_s17  ;;  %437 = vrot.lane.b32.xlu0 %v398_v14, %s1046_s29  ;;  %s895_s17 = scalar_lea.vmem %s894_s6, 512 }
 0x12b   : > { %p897_p5 = scmp.lt.s32.totalorder %s895_s17, %s889_s24 }
 0x12d   : > { %p898_p7 = por %p897_p5, %p896_p3 }
 0x12e   : > { %452 = vrot.lane.b32.xlu0 %v398_v14, %s1047_s8 }
 0x12f   : > { %p899_p2 = pnand %p898_p7, %p892_p12 }
 0x18c   : > { %v433_v15 = vpop.permute.xlu1 %432  ;;  %v405_v16 = vpop.permute.xlu0 %404 }
 0x18d   : > { %703 = vst.msk [vmem:[%s304_s1 + $0x8] sm:$0xf] %vm399_vm3, %v433_v15  ;;  %407 = vst.msk [vmem:[%s304_s1] sm:$0xf] %vm399_vm3, %v405_v16 }
 0x190   : > { %v448_v17 = vpop.permute.xlu1 %447  ;;  %v418_v18 = vpop.permute.xlu0 %417 }
 0x191   : > { %706 = vst.msk [vmem:[%s304_s1 + $0xc] sm:$0xf] %vm399_vm3, %v448_v17  ;;  %700 = vst.msk [vmem:[%s304_s1 + $0x4] sm:$0xf] %vm399_vm3, %v418_v18 }
 0x192   : > { %902 = shalt.err (!%p899_p2)
}
 0x193   : > { %s903_s29 = scalar_lea.hbm %s1234_s12, 256  ;;  %s907_s28 = scalar_lea.hbm %s1378_s4, 512 }
 0x194   : > { %p904_p6 = scmp.ne.s32.totalorder %s1234_s12, %s903_s29  ;;  %p908_p11 = scmp.lt.s32.totalorder %s1234_s12, %s1378_s4 }
 0x195   : > { %p909_p1 = scmp.lt.s32.totalorder %s907_s28, %s903_s29 }
 0x196   : > { %p905_p9 = pnand %p904_p6, %p1167_p0 }
 0x197   : > { %p910_p10 = por %p909_p1, %p908_p11 }
 0x198   : > { %p906_p13 = pneg %p905_p9 }
 0x19a   : > { %p911_p4 = pnand %p910_p10, %p906_p13 }
 0x19c   : > { %914 = shalt.err (!%p911_p4)
}
 0x19d   : > { %s1049_s24 = smov 4   ;;  %v413_v19 = vpop.permute.xlu1 %412  ;;  %v409_v20 = vpop.permute.xlu0 %408  ;;  %s1267_s13 = scalar_lea.vmem [#allocation11], %s1213_s26 }
 0x19e   : > { %741 = dma.vmem_to_hbm [thread:$0]  (%p1167_p0), %s1228_s25, 256, %s1234_s12, %s1238_s21, %s1042_s16, %s1042_s16, %s1049_s24  }
 0x19f   : > { %699 = vst.msk [vmem:[%s1216_s9 + $0x4] sm:$0xf] %vm399_vm3, %v413_v19  ;;  %411 = vst.msk [vmem:[%s1267_s13] sm:$0xf] %vm399_vm3, %v409_v20  ;;  %s482_s6 = sshll.u32 %s1216_s9, 4  ;;  %s1282_s26 = scalar_lea.hbm %s1377_s3, %s1224_s7  ;;  %s1276_s6 = int_to_ptr.vmem [resolvable:$true] %s482_s6 }
 0x1a0   : > { %s516_s17 = sshll.u32 %s1267_s13, 4  ;;  %s458_s29 = scalar_lea.sflag [#allocation5], %s1195_s14  ;;  %s1315_s17 = int_to_ptr.vmem [resolvable:$true] %s516_s17 }
 0x1a1   : > { %v428_v21 = vpop.permute.xlu1 %427  ;;  %v423_v22 = vpop.permute.xlu0 %422  ;;  %s915_s8 = scalar_lea.vmem %s1276_s6, 256  ;;  %s1050_s1 = smov [#allocation8]  }
 0x1a2   : > { %702 = vst.msk [vmem:[%s1216_s9 + $0x8] sm:$0xf] %vm399_vm3, %v428_v21  ;;  %701 = vst.msk [vmem:[%s1267_s13 + $0x4] sm:$0xf] %vm399_vm3, %v423_v22  ;;  %p916_p8 = scmp.ne.s32.totalorder %s1276_s6, %s915_s8  ;;  %s919_s28 = sshll.u32 %s1050_s1, 4  ;;  %s920_s28 = int_to_ptr.vmem [resolvable:$false] %s919_s28 }
 0x1a3   : > { %s921_s10 = scalar_lea.vmem %s920_s28, 512  ;;  %p922_p5 = scmp.lt.s32.totalorder %s1276_s6, %s920_s28 }
 0x1a4   : > { %p917_p12 = pnand %p916_p8, %p1167_p0  ;;  %p923_p7 = scmp.lt.s32.totalorder %s921_s10, %s915_s8 }
 0x1a5   : > { %v443_v23 = vpop.permute.xlu1 %442  ;;  %v438_v24 = vpop.permute.xlu0 %437 }
 0x1a6   : > { %705 = vst.msk [vmem:[%s1216_s9 + $0xc] sm:$0xf] %vm399_vm3, %v443_v23  ;;  %704 = vst.msk [vmem:[%s1267_s13 + $0x8] sm:$0xf] %vm399_vm3, %v438_v24  ;;  %p918_p3 = pneg %p917_p12  ;;  %p924_p2 = por %p923_p7, %p922_p5 }
 0x1a8   : > { %p925_p6 = pnand %p924_p2, %p918_p3 }
 0x1aa   : > { %928 = shalt.err (!%p925_p6)
}
 0x1ab   : > { %s929_s9 = scalar_lea.hbm %s1282_s26, 256  ;;  %s933_s25 = scalar_lea.hbm %s1377_s3, 512 }
 0x1ac   : > { %p930_p9 = scmp.ne.s32.totalorder %s1282_s26, %s929_s9  ;;  %p934_p1 = scmp.lt.s32.totalorder %s1282_s26, %s1377_s3 }
 0x1ad   : > { %p935_p10 = scmp.lt.s32.totalorder %s933_s25, %s929_s9 }
 0x1ae   : > { %p931_p13 = pnand %p930_p9, %p1167_p0 }
 0x1af   : > { %p936_p4 = por %p935_p10, %p934_p1 }
 0x1b0   : > { %p932_p11 = pneg %p931_p13 }
 0x1b2   : > { %p937_p8 = pnand %p936_p4, %p932_p11 }
 0x1b4   : > { %940 = shalt.err (!%p937_p8)
}
 0x1b5   : > { %740 = dma.vmem_to_hbm [thread:$0]  (%p1167_p0), %s1276_s6, 256, %s1282_s26, %s458_s29, %s1042_s16, %s1042_s16, %s1049_s24   ;;  %v453_v25 = vpop.permute.xlu0 %452 }
 0x1b6   : > { %s1321_s10 = scalar_lea.hbm %s1379_s5, %s1224_s7  ;;  %707 = vst.msk [vmem:[%s1267_s13 + $0xc] sm:$0xf] %vm399_vm3, %v453_v25  ;;  %s941_s9 = scalar_lea.vmem %s1315_s17, 256 }
 0x1b7   : > { %p942_p12 = scmp.ne.s32.totalorder %s1315_s17, %s941_s9  ;;  %s1051_s6 = smov [#allocation11]  }
 0x1b8   : > { %s945_s26 = sshll.u32 %s1051_s6, 4  ;;  %s946_s26 = int_to_ptr.vmem [resolvable:$false] %s945_s26 }
 0x1b9   : > { %p943_p3 = pnand %p942_p12, %p1167_p0  ;;  %s947_s29 = scalar_lea.vmem %s946_s26, 512 }
 0x1ba   : > { %p948_p7 = scmp.lt.s32.totalorder %s1315_s17, %s946_s26  ;;  %p949_p2 = scmp.lt.s32.totalorder %s947_s29, %s941_s9 }
 0x1bb   : > { %p944_p5 = pneg %p943_p3 }
 0x1bc   : > { %p950_p6 = por %p949_p2, %p948_p7 }
 0x1be   : > { %p951_p9 = pnand %p950_p6, %p944_p5 }
 0x1c0   : > { %954 = shalt.err (!%p951_p9)
}
 0x1c1   : > { %s955_s7 = scalar_lea.hbm %s1321_s10, 256  ;;  %s959_s11 = scalar_lea.hbm %s1379_s5, 512 }
 0x1c2   : > { %p956_p13 = scmp.ne.s32.totalorder %s1321_s10, %s955_s7  ;;  %p960_p10 = scmp.lt.s32.totalorder %s1321_s10, %s1379_s5 }
 0x1c3   : > { %p961_p4 = scmp.lt.s32.totalorder %s959_s11, %s955_s7 }
 0x1c4   : > { %p957_p11 = pnand %p956_p13, %p1167_p0 }
 0x1c5   : > { %p962_p8 = por %p961_p4, %p960_p10 }
 0x1c6   : > { %p958_p1 = pneg %p957_p11 }
 0x1c8   : > { %p963_p12 = pnand %p962_p8, %p958_p1 }
 0x1ca   : > { %966 = shalt.err (!%p963_p12)
}
 0x1cb   : > { %742 = dma.vmem_to_hbm [thread:$0]  (%p1167_p0), %s1315_s17, 256, %s1321_s10, %s1238_s21, %s1042_s16, %s1042_s16, %s1049_s24  }
 0x1cc PF: > { %s531_s1 = sand.u32 1, %s1009_s18   ;;  %p1396_p3 = scmp.ne.s32.totalorder %s1385_s27, 0 }
 0x1cd   : > { %p1397_p5 = scmp.ge.s32.totalorder %s1029_s23, 2  ;;  %s532_s8 = scalar_lea.sflag [#allocation5], %s531_s1 }
 0x1cf   : > { %p755_p7 = pnand %p1397_p5, %p1396_p3 }
 0x1d1   : > { %p756_p2 = pneg %p755_p7 }
 0x1d3   : > { %1000 = dma.done.wait (%p756_p2), %s532_s8, 256  }
 0x1d4   : > { %1002 = vsyncadd (%p756_p2), %s532_s8, 4294967040  ;;  %s1398_s15 = sadd.s32 4294967294, %s1029_s23  }
 0x1d5   : > { %s540_s28 = sand.u32 1, %s1398_s15  }
 0x1d6   : > { %s541_s9 = scalar_lea.sflag [#allocation10], %s540_s28 }
 0x1d7   : > { %1004 = dma.done.wait (%p756_p2), %s541_s9, 512  }
 0x1d8   : > { %1006 = vsyncadd (%p756_p2), %s541_s9, 4294966784  ;;  %s26_s23 = sadd.s32 1, %s1029_s23   ;;  %s1399_s27 = sld [smem:[#allocation16_spill]] }
 0x1d9   : > { %p23_p0 = scmp.ge.s32.totalorder %s26_s23, 4   ;;  %s1400_s18 = smov %s1013_s19 }
 0x1da   : > { %s1401_s19 = smov %s1017_s20  ;;  %s1402_s20 = smov %s1176_s30 }
 0x1db   : > { %s1403_s21 = smov %s1025_s22  ;;  %25 = sbr.rel (!%p23_p0) target bundleno = 11 (0xb), region = 131 }
 0x1de   : > { %s1404_s22 = smov %s1399_s27 }
 0x1e0   :  { %555 = vsyncpa [#allocation4], 1 }
 0x1e1   :  { %557 = vsyncpa [#allocation4 + $0x1], 1 }
 0x1e2   :  { %558 = vsyncpa [#allocation7], 1 }
 0x1e3   :  { %559 = vsyncpa [#allocation5], 1 }
 0x1e4   :  { %561 = vsyncpa [#allocation5 + $0x1], 1 }
 0x1e5   :  { %562 = vsyncpa [#allocation10], 1 }
 0x1e6   :  { %564 = vsyncpa [#allocation10 + $0x1], 1 }

</bundles_post_ra>
